<compile_context>
chip_gen: v7x
topology: tpu7x:2x2x1
jax: 0.10.0
libtpu: 0.0.40
codegen_flags: <defaults>
</compile_context>

<pallas_src>
import functools

import jax
import jax.numpy as jnp
from jax.experimental import pallas as pl
from jax.experimental.pallas import tpu as pltpu


# ----------------------------------------------------------------------------
# Fused kernel: one MXU matmul -> BN batch stats -> folded affine + ReLU
# ----------------------------------------------------------------------------
def cbn_kernel(eps, inv_count, col_ref, w_ref, gb_ref, o_ref):
    # col_ref: (9*Cin, N*H*W)  im2col matrix, spatial on lanes
    # w_ref:   (Cout, 9*Cin)   conv weight, K flattened as (cin, dy, dx)
    # gb_ref:  (Cout, 2)       [:, 0] = gamma, [:, 1] = beta
    # o_ref:   (N, Cout, H*W)  fused output (NCHW with HW flattened)
    N, Cout, HW = o_ref.shape

    # ---- conv: canonical (Cout, K) @ (K, M), channel-major result ---------
    conv = jax.lax.dot_general(
        w_ref[...], col_ref[...],
        dimension_numbers=(((1,), (0,)), ((), ())),
        preferred_element_type=jnp.float32)                     # (Cout, N*HW)

    # ---- training-mode BatchNorm stats (per channel, over lanes) ----------
    mean = jnp.sum(conv, axis=1, keepdims=True) * inv_count              # (Cout, 1)
    var = jnp.sum(jnp.square(conv - mean), axis=1, keepdims=True) * inv_count

    # ---- folded affine + ReLU: single multiply-add pass over the slab -----
    gamma = gb_ref[:, 0:1]
    beta = gb_ref[:, 1:2]
    scale = gamma * jax.lax.rsqrt(var + eps)                             # (Cout, 1)
    shift = beta - mean * scale                                          # (Cout, 1)
    z = jnp.maximum(conv * scale + shift, 0.0)                           # (Cout, N*HW)

    # Lane-dense stores: HW is a multiple of 128 at the demo shapes.
    for n in range(N):
        o_ref[n] = z[:, n * HW:(n + 1) * HW]


# ----------------------------------------------------------------------------
# Wrapper
# ----------------------------------------------------------------------------
@functools.partial(jax.jit, static_argnames=("eps",))
def cbn_forward(x_nchw, weight, bias, gamma, beta, eps=1e-5):
    """x_nchw: [N, Cin, H, W]; weight: [Cout, Cin, 3, 3]; returns [N, Cout, H, W]."""
    del bias  # cancels exactly under batch-statistics BN (mean subtraction)
    N, Cin, H, W = x_nchw.shape
    Cout = weight.shape[0]
    HW = H * W
    K = 9 * Cin

    # Wrapper-side im2col fused with pad/cast (one XLA pass over the input):
    # col[ci*9 + dy*3 + dx, n*HW + h*W + w] = x_pad[n, ci, h+dy, w+dx]
    x_pad = jnp.pad(x_nchw.astype(jnp.float32), ((0, 0), (0, 0), (1, 1), (1, 1)))
    patches = jnp.stack(
        [x_pad[:, :, dy:dy + H, dx:dx + W] for dy in range(3) for dx in range(3)],
        axis=0)                                               # (9, N, Cin, H, W)
    col = jnp.transpose(patches, (2, 0, 1, 3, 4)).reshape(K, N * HW)

    # Weight (Cout, Cin, 3, 3) -> (Cout, 9*Cin); same K ordering (ci, dy, dx).
    w = weight.reshape(Cout, K).astype(jnp.float32)
    # Pack gamma/beta into one tile -> one DMA.
    gb = jnp.stack([gamma.astype(jnp.float32), beta.astype(jnp.float32)], axis=1)

    o = pl.pallas_call(
        functools.partial(cbn_kernel, float(eps), 1.0 / float(N * HW)),
        out_shape=jax.ShapeDtypeStruct((N, Cout, HW), jnp.float32),
        grid=(1,),                               # whole problem fits in VMEM
        in_specs=[
            pl.BlockSpec((K, N * HW), lambda i: (0, 0)),
            pl.BlockSpec((Cout, K), lambda i: (0, 0)),
            pl.BlockSpec((Cout, 2), lambda i: (0, 0)),
        ],
        out_specs=pl.BlockSpec((N, Cout, HW), lambda i: (0, 0, 0)),
        compiler_params=pltpu.CompilerParams(
            dimension_semantics=("arbitrary",)),
    )(col, w, gb)

    return o.reshape(N, Cout, H, W)              # channel-major -> NCHW, free


# ----------------------------------------------------------------------------
# Pure-JAX reference (correctness sanity check)
# ----------------------------------------------------------------------------
def cbn_reference(x_nchw, weight, bias, gamma, beta, eps=1e-5):
    x = jnp.transpose(x_nchw, (0, 2, 3, 1))                # NHWC
    w = jnp.transpose(weight, (2, 3, 1, 0))                # HWIO
    y = jax.lax.conv_general_dilated(
        x, w, window_strides=(1, 1), padding="SAME",
        dimension_numbers=("NHWC", "HWIO", "NHWC")) + bias
    mean = jnp.mean(y, axis=(0, 1, 2))
    var = jnp.mean((y - mean) ** 2, axis=(0, 1, 2))        # biased
    y = (y - mean) * jax.lax.rsqrt(var + eps) * gamma + beta
    y = jnp.maximum(y, 0.0)
    return jnp.transpose(y, (0, 3, 1, 2))


if __name__ == "__main__":
    # Small shapes consistent with the module: N=2, Cin=4, Cout=8, H=W=16.
    N, Cin, Cout, H, W = 2, 4, 8, 16, 16

    key = jax.random.PRNGKey(0)
    kx, kw, kb, kg, kbt = jax.random.split(key, 5)

    x = jax.random.normal(kx, (N, Cin, H, W), dtype=jnp.float32)
    # Deterministic synthetic parameters (shapes from nn.Conv2d / nn.BatchNorm2d).
    fan_in = Cin * 3 * 3
    bound = 1.0 / (fan_in ** 0.5)
    weight = jax.random.uniform(kw, (Cout, Cin, 3, 3), jnp.float32, -bound, bound)
    bias = jax.random.uniform(kb, (Cout,), jnp.float32, -bound, bound)
    gamma = 1.0 + 0.1 * jax.random.normal(kg, (Cout,), dtype=jnp.float32)
    beta = 0.1 * jax.random.normal(kbt, (Cout,), dtype=jnp.float32)

    out = cbn_forward(x, weight, bias, gamma, beta)
    out = jax.block_until_ready(out)

    ref = cbn_reference(x, weight, bias, gamma, beta)
    assert out.shape == (N, Cout, H, W)
    assert jnp.allclose(out, ref, atol=1e-4, rtol=1e-4), (
        float(jnp.max(jnp.abs(out - ref))))

    print("KERNEL_OK")
</pallas_src>

<mosaic_0001>
module attributes {stable_mosaic.version = 11 : i64} {
  func.func @cbn_kernel(%arg0: i32, %arg1: memref<36x512xf32, #tpu.memory_space<vmem>>, %arg2: memref<8x36xf32, #tpu.memory_space<vmem>>, %arg3: memref<8x2xf32, #tpu.memory_space<vmem>>, %arg4: memref<2x8x256xf32, #tpu.memory_space<vmem>>) attributes {dimension_semantics = [#tpu.dimension_semantics<arbitrary>], iteration_bounds = array<i64: 1>, scalar_prefetch = 0 : i64, scratch_operands = 0 : i64, tpu.core_type = #tpu.core_type<tc>, window_params = [{pipeline_mode = #tpu.pipeline_mode<synchronous>, transform_indices = @transform_0, window_bounds = array<i64: 36, 512>}, {pipeline_mode = #tpu.pipeline_mode<synchronous>, transform_indices = @transform_1, window_bounds = array<i64: 8, 36>}, {pipeline_mode = #tpu.pipeline_mode<synchronous>, transform_indices = @transform_2, window_bounds = array<i64: 8, 2>}, {pipeline_mode = #tpu.pipeline_mode<synchronous>, transform_indices = @transform_3, window_bounds = array<i64: 2, 8, 256>}]} {
    %c0 = arith.constant 0 : index
    %c0_0 = arith.constant 0 : index
    %0 = vector.load %arg2[%c0, %c0_0] : memref<8x36xf32, #tpu.memory_space<vmem>>, vector<8x36xf32>
    %c0_1 = arith.constant 0 : index
    %c0_2 = arith.constant 0 : index
    %1 = vector.load %arg1[%c0_1, %c0_2] : memref<36x512xf32, #tpu.memory_space<vmem>>, vector<36x512xf32>
    %cst = arith.constant dense<0.000000e+00> : vector<8x512xf32>
    %2 = tpu.matmul %0, %1, %cst {dimension_numbers = #tpu.dot_dimension_numbers<[1], [0], [0], [1], [0, 0, 1, 1], [], []>} : vector<8x36xf32>, vector<36x512xf32>, vector<8x512xf32> -> vector<8x512xf32>
    %cst_3 = arith.constant dense<0.000000e+00> : vector<8xf32>
    %3 = vector.multi_reduction <add>, %2, %cst_3 [1] : vector<8x512xf32> to vector<8xf32>
    %4 = vector.shape_cast %3 : vector<8xf32> to vector<8x1xf32>
    %cst_4 = arith.constant 0.001953125 : f32
    %5 = vector.broadcast %cst_4 : f32 to vector<8x1xf32>
    %6 = arith.mulf %4, %5 : vector<8x1xf32>
    %7 = vector.broadcast %6 : vector<8x1xf32> to vector<8x512xf32>
    %8 = arith.subf %2, %7 : vector<8x512xf32>
    %9 = arith.mulf %8, %8 : vector<8x512xf32>
    %cst_5 = arith.constant dense<0.000000e+00> : vector<8xf32>
    %10 = vector.multi_reduction <add>, %9, %cst_5 [1] : vector<8x512xf32> to vector<8xf32>
    %11 = vector.shape_cast %10 : vector<8xf32> to vector<8x1xf32>
    %cst_6 = arith.constant 0.001953125 : f32
    %12 = vector.broadcast %cst_6 : f32 to vector<8x1xf32>
    %13 = arith.mulf %11, %12 : vector<8x1xf32>
    %c0_7 = arith.constant 0 : index
    %c0_8 = arith.constant 0 : index
    %14 = vector.load %arg3[%c0_7, %c0_8] : memref<8x2xf32, #tpu.memory_space<vmem>>, vector<8x1xf32>
    %c0_9 = arith.constant 0 : index
    %c1 = arith.constant 1 : index
    %15 = vector.load %arg3[%c0_9, %c1] : memref<8x2xf32, #tpu.memory_space<vmem>>, vector<8x1xf32>
    %cst_10 = arith.constant 9.99999974E-6 : f32
    %16 = vector.broadcast %cst_10 : f32 to vector<8x1xf32>
    %17 = arith.addf %13, %16 : vector<8x1xf32>
    %18 = math.rsqrt %17 : vector<8x1xf32>
    %19 = arith.mulf %14, %18 : vector<8x1xf32>
    %20 = arith.mulf %6, %19 : vector<8x1xf32>
    %21 = arith.subf %15, %20 : vector<8x1xf32>
    %22 = vector.broadcast %19 : vector<8x1xf32> to vector<8x512xf32>
    %23 = arith.mulf %2, %22 : vector<8x512xf32>
    %24 = vector.broadcast %21 : vector<8x1xf32> to vector<8x512xf32>
    %25 = arith.addf %23, %24 : vector<8x512xf32>
    %cst_11 = arith.constant 0.000000e+00 : f32
    %26 = vector.broadcast %cst_11 : f32 to vector<8x512xf32>
    %27 = arith.maximumf %25, %26 : vector<8x512xf32>
    %28 = vector.extract_strided_slice %27 {offsets = [0, 0], sizes = [8, 256], strides = [1, 1]} : vector<8x512xf32> to vector<8x256xf32>
    %c0_12 = arith.constant 0 : index
    %c0_13 = arith.constant 0 : index
    %c0_14 = arith.constant 0 : index
    %29 = vector.load %arg4[%c0_12, %c0_13, %c0_14] : memref<2x8x256xf32, #tpu.memory_space<vmem>>, vector<1x8x256xf32>
    %30 = vector.shape_cast %29 : vector<1x8x256xf32> to vector<8x256xf32>
    %31 = vector.shape_cast %28 : vector<8x256xf32> to vector<1x8x256xf32>
    tpu.vector_store %arg4[%c0_12, %c0_13, %c0_14], %31 {strides = array<i32>} : memref<2x8x256xf32, #tpu.memory_space<vmem>>, vector<1x8x256xf32>,
    %32 = vector.extract_strided_slice %27 {offsets = [0, 256], sizes = [8, 256], strides = [1, 1]} : vector<8x512xf32> to vector<8x256xf32>
    %c1_15 = arith.constant 1 : index
    %c0_16 = arith.constant 0 : index
    %c0_17 = arith.constant 0 : index
    %33 = vector.load %arg4[%c1_15, %c0_16, %c0_17] : memref<2x8x256xf32, #tpu.memory_space<vmem>>, vector<1x8x256xf32>
    %34 = vector.shape_cast %33 : vector<1x8x256xf32> to vector<8x256xf32>
    %35 = vector.shape_cast %32 : vector<8x256xf32> to vector<1x8x256xf32>
    tpu.vector_store %arg4[%c1_15, %c0_16, %c0_17], %35 {strides = array<i32>} : memref<2x8x256xf32, #tpu.memory_space<vmem>>, vector<1x8x256xf32>,
    return
  }
  func.func @transform_0(%arg0: i32) -> (i32, i32) {
    %c0_i32 = arith.constant 0 : i32
    %c0_i32_0 = arith.constant 0 : i32
    %c0_i32_1 = arith.constant 0 : i32
    return %c0_i32, %c0_i32_0 : i32, i32
  }
  func.func @transform_1(%arg0: i32) -> (i32, i32) {
    %c0_i32 = arith.constant 0 : i32
    %c0_i32_0 = arith.constant 0 : i32
    %c0_i32_1 = arith.constant 0 : i32
    return %c0_i32, %c0_i32_0 : i32, i32
  }
  func.func @transform_2(%arg0: i32) -> (i32, i32) {
    %c0_i32 = arith.constant 0 : i32
    %c0_i32_0 = arith.constant 0 : i32
    %c0_i32_1 = arith.constant 0 : i32
    return %c0_i32, %c0_i32_0 : i32, i32
  }
  func.func @transform_3(%arg0: i32) -> (i32, i32, i32) {
    %c0_i32 = arith.constant 0 : i32
    %c0_i32_0 = arith.constant 0 : i32
    %c0_i32_1 = arith.constant 0 : i32
    %c0_i32_2 = arith.constant 0 : i32
    return %c0_i32, %c0_i32_0, %c0_i32_1 : i32, i32, i32
  }
}

</mosaic_0001>

<bundles_post_ra>
// kernel: cbn_forward.1
= control target key start
LH: loop header
LB: loop body
LE: loop exit
PB: predicated region body
PF: predicated region fallthrough
CT: control target
= control target key end

     0   :  { %v287_v3 = vmov 0.0   ;;  %vm39_vm0 = vcmask 1043456   ;;  %vm35_vm1 = vcmask 293888   ;;  %v288_v50 = vmov 0   ;;  %s290_s27 = smov 1   ;;  %s389_s0 = inlined_call_operand.vmem [shape: f32[36,512], index: 0, kind: input, shape index: {}]   ;;  %s390_s1 = inlined_call_operand.vmem [shape: f32[8,36], index: 1, kind: input, shape index: {}]   ;;  %s391_s2 = inlined_call_operand.vmem [shape: f32[8,2], index: 2, kind: input, shape index: {}]   ;;  %s392_s3 = inlined_call_operand.vmem [shape: f32[2,8,256], index: 3, kind: output, shape index: {}]  }
   0x1   :  { %v16_v0 = vld [vmem:[%s389_s0 + $0x8] sm:$0xff]  ;;  %v15_v2 = vld [vmem:[%s389_s0] sm:$0xff]  ;;  %116 = vmatprep.mubr.f32.mxu0 %v287_v3  ;;  %187 = vmatprep.mubr.f32.mxu1 %v287_v3  ;;  %v18_v6 = vld [vmem:[%s389_s0 + $0x18] sm:$0xff]  ;;  %v289_v54 = vmov 1  }
   0x2   :  { %v20_v1 = vld [vmem:[%s389_s0 + $0x28] sm:$0xff]  ;;  %v19_v5 = vld [vmem:[%s389_s0 + $0x20] sm:$0xff]  ;;  %v22_v7 = vld [vmem:[%s389_s0 + $0x38] sm:$0xff]  ;;  %283 = vset.pattern.permute.xlu1 %v288_v50  ;;  %284 = vset.pattern.permute.xlu0 %v289_v54 }
   0x3   :  { %v263_v4 = vpack.c.bf16 %v20_v1, %v16_v0  ;;  %v265_v8 = vpack.c.bf16 %v19_v5, %v15_v2  ;;  %v271_v9 = vpack.c.bf16 %v22_v7, %v18_v6  ;;  %v17_v10 = vld [vmem:[%s389_s0 + $0x10] sm:$0xff]  ;;  %v24_v12 = vld [vmem:[%s389_s0 + $0x48] sm:$0xff]  ;;  %v23_v15 = vld [vmem:[%s389_s0 + $0x40] sm:$0xff] }
   0x4   :  { %v21_v11 = vld [vmem:[%s389_s0 + $0x30] sm:$0xff]  ;;  %v28_v14 = vld [vmem:[%s389_s0 + $0x68] sm:$0xff]  ;;  %v27_v16 = vld [vmem:[%s389_s0 + $0x60] sm:$0xff] }
   0x5   :  { %264 = vmatprep.subr.bf16.mxu0 %v263_v4  ;;  %v273_v13 = vpack.c.bf16 %v21_v11, %v17_v10  ;;  %272 = vmatprep.subr.bf16.mxu1 %v271_v9  ;;  %v267_v17 = vpack.c.bf16 %v28_v14, %v24_v12  ;;  %v269_v18 = vpack.c.bf16 %v27_v16, %v23_v15  ;;  %v26_v19 = vld [vmem:[%s389_s0 + $0x58] sm:$0xff]  ;;  %v25_v21 = vld [vmem:[%s389_s0 + $0x50] sm:$0xff]  ;;  %v32_v25 = vld [vmem:[%s389_s0 + $0x88] sm:$0xf] }
   0x6   :  { %266 = vmatpush1.bf16.msra.mxu0 %v265_v8  ;;  %v30_v20 = vld [vmem:[%s389_s0 + $0x78] sm:$0xff]  ;;  %v29_v23 = vld [vmem:[%s389_s0 + $0x70] sm:$0xff]  ;;  %v31_v27 = vld [vmem:[%s389_s0 + $0x80] sm:$0xf] }
   0x7   :  { %274 = vmatpush1.bf16.msra.mxu1 %v273_v13  ;;  %v275_v22 = vpack.c.bf16 %v30_v20, %v26_v19  ;;  %268 = vmatprep.subr.bf16.mxu0 %v267_v17  ;;  %v277_v24 = vpack.c.bf16 %v29_v23, %v25_v21  ;;  %v34_v26 = vld [vmem:[%s389_s0 + $0x98] sm:$0xf]  ;;  %v14_v28 = vld [vmem:[%s390_s1] sm:$0xff]  ;;  %v33_v29 = vld [vmem:[%s389_s0 + $0x90] sm:$0xf] }
   0x8   :  { %v214_v55 = vld [vmem:[%s391_s2] sm:$0xff] }
   0x9   :  { %276 = vmatprep.subr.bf16.mxu1 %v275_v22 }
   0xa   :  { %270 = vmatpush1.bf16.msra.mxu0 %v269_v18 }
   0xb   :  { %278 = vmatpush1.bf16.msra.mxu1 %v277_v24  ;;  %255 = vmatprep.subr.msk.mxu0 %vm39_vm0, %v32_v25 }
   0xc   :  { %258 = vmatprep.subr.msk.mxu1 %vm39_vm0, %v34_v26 }
   0xe   :  { %256 = vmatpush1.msk.msra.mxu0 %vm39_vm0, %v31_v27 }
   0xf   :  { %257 = vmatmul.mubr.msk.f32.vlgmr.msra.gmra.mrb[0].mxu0 %vm35_vm1, %v14_v28  ;;  %259 = vmatpush1.msk.msra.mxu1 %vm39_vm0, %v33_v29 }
  0x10   :  { %260 = vmatmul.mubr.msk.f32.vlgmr.msra.gmra.mrb[0].mxu1 %vm35_vm1, %v14_v28 }
  0xe2   :  { %v118_v30 = vpop.f32.mrb[0].mxu0 }
  0xe3   :  { %v120_v31 = vpop.f32.mrb[1].mxu0  ;;  %v189_v32 = vpop.f32.mrb[0].mxu1 }
  0xe4   :  { %v194_v33 = vadd.f32 %v120_v31, %v118_v30  ;;  %v191_v34 = vpop.f32.mrb[1].mxu1 }
  0xe6   :  { %v195_v35 = vadd.f32 %v194_v33, %v189_v32 }
  0xe8   :  { %v196_v36 = vadd.f32 %v195_v35, %v191_v34 }
  0xea   :  { %197 = vadd.xlane.f32.xlu0 %v196_v36 }
 0x177   :  { %v198_v37 = vpop.xlane.xlu0 %197 }
 0x178   :  { %v199_v38 = vmul.f32 0.001953125, %v198_v37 }
 0x17a   :  { %v200_v39 = vsub.f32 %v118_v30, %v199_v38  ;;  %v201_v40 = vsub.f32 %v120_v31, %v199_v38  ;;  %v202_v41 = vsub.f32 %v189_v32, %v199_v38  ;;  %v203_v42 = vsub.f32 %v191_v34, %v199_v38 }
 0x17c   :  { %v204_v43 = vmul.f32 %v200_v39, %v200_v39  ;;  %v205_v44 = vmul.f32 %v201_v40, %v201_v40  ;;  %v206_v45 = vmul.f32 %v202_v41, %v202_v41  ;;  %v207_v47 = vmul.f32 %v203_v42, %v203_v42 }
 0x17e   :  { %v208_v46 = vadd.f32 %v205_v44, %v204_v43 }
 0x180   :  { %v209_v48 = vadd.f32 %v208_v46, %v206_v45 }
 0x182   :  { %v210_v49 = vadd.f32 %v209_v48, %v207_v47 }
 0x184   :  { %211 = vadd.xlane.f32.xlu0 %v210_v49 }
 0x211   :  { %v212_v51 = vpop.xlane.xlu0 %211 }
 0x212   :  { %v213_v52 = vmul.f32 0.001953125, %v212_v51 }
 0x214   :  { %v215_v53 = vadd.f32 1e-05, %v213_v52 }
 0x216   :  { %285 = vrsqrt.f32 %v215_v53 }
 0x220   :  { %v286_v56 = vpop.eup %285 }
 0x221   :  { %v217_v57 = vmul.f32 %v286_v56, %v214_v55 }
 0x223   :  { %v218_v58 = vmul.f32 %v217_v57, %v199_v38 }
 0x225   :  { %220 = vrot.lane.b32.xlu1 %v218_v58, %s290_s27 }
 0x229   :  { %226 = vperm.xlu1 %283, %v217_v57  }
 0x297   :  { %v221_v59 = vpop.permute.xlu1 %220 }
 0x298   :  { %v223_v60 = vsub.f32 %v214_v55, %v221_v59 }
 0x29a   :  { %235 = vperm.xlu0 %284, %v223_v60  }
 0x2a8   :  { %v227_v61 = vpop.permute.xlu1 %226 }
 0x2a9   :  { %v229_v62 = vmul.f32 %v227_v61, %v118_v30  ;;  %v230_v63 = vmul.f32 %v227_v61, %v120_v31  ;;  %v231_v0 = vmul.f32 %v227_v61, %v189_v32  ;;  %v232_v1 = vmul.f32 %v227_v61, %v191_v34 }
 0x319   :  { %v236_v2 = vpop.permute.xlu0 %235 }
 0x31a   :  { %v238_v3 = vadd.f32 %v236_v2, %v229_v62  ;;  %v239_v4 = vadd.f32 %v236_v2, %v230_v63  ;;  %v240_v5 = vadd.f32 %v236_v2, %v231_v0  ;;  %v241_v6 = vadd.f32 %v236_v2, %v232_v1 }
 0x31c   :  { %v242_v7 = vmax.f32 %v238_v3, 0.0  ;;  %v243_v8 = vmax.f32 %v239_v4, 0.0  ;;  %v244_v9 = vmax.f32 %v240_v5, 0.0  ;;  %v245_v10 = vmax.f32 %v241_v6, 0.0 }
 0x31e   :  { %246 = vst [vmem:[%s392_s3] sm:$0xff] %v242_v7  ;;  %247 = vst [vmem:[%s392_s3 + $0x8] sm:$0xff] %v243_v8 }
 0x31f   :  { %261 = vst [vmem:[%s392_s3 + $0x10] sm:$0xff] %v244_v9  ;;  %262 = vst [vmem:[%s392_s3 + $0x18] sm:$0xff] %v245_v10 }

</bundles_post_ra>
